<compile_context>
chip_gen: v7x
topology: tpu7x:2x2x1
jax: 0.10.0
libtpu: 0.0.40
codegen_flags: <defaults>
</compile_context>

<pallas_src>
import functools
import math

import jax
import jax.numpy as jnp
from jax.experimental import pallas as pl
from jax.experimental.pallas import tpu as pltpu


_MIN_GRID_STEPS = 4            # keep both v7x TCs fed + cross-step DMA overlap
_TILE_VMEM_BUDGET = 32 << 20   # resident-pipeline budget used for tile sizing
_VMEM_LIMIT_FLOOR = 32 << 20   # never request less than the v6e/v7x default
_VMEM_LIMIT_CAP = 48 << 20     # safe on v7x (64 MiB/TC); v5e/v6e have 128 MiB


def _cdiv(a, b):
    return -(-a // b)


def _round_up(x, m):
    return _cdiv(x, m) * m


def _sublane_rows(itemsize):
    # Sublane tile height: f32 -> 8, bf16 -> 16, int8/fp8 -> 32.
    return max(8, 32 // max(itemsize, 1))


def _resident_bytes_per_col(reduced_extent_padded, itemsize):
    # 4 HBM arrays (2 in + 2 out), double-buffered, in the I/O dtype, plus
    # ~7 live f32 block-sized intermediates (fm, fv, em, lv, om, sqrt arg, ov).
    return reduced_extent_padded * (4 * 2 * itemsize + 7 * 4)


def _vmem_limit_bytes(resident):
    return int(min(_VMEM_LIMIT_CAP,
                   max(_VMEM_LIMIT_FLOOR, resident * 5 // 4 + (2 << 20))))


def _pick_tile_m(B, C, M, itemsize):
    """Lane tile for the (B, C, M) path: as big as VMEM allows, >=4 steps."""
    c_pad = _round_up(C, _sublane_rows(itemsize))
    per_lane = _resident_bytes_per_col(c_pad, itemsize)
    # TODO(synk): extremely large C (per_lane * 128 > budget) would need a
    # channel-tiled two-pass reduction; not implemented.
    cap = max(128, (_TILE_VMEM_BUDGET // per_lane) // 128 * 128)

    if M <= 128:
        tile_m = M                              # full dim -> legal block
    else:
        tile_m = min(cap, (M // 128) * 128)     # lane-aligned, in-bounds blocks
        if B * _cdiv(M, tile_m) < _MIN_GRID_STEPS:
            want_m_tiles = _cdiv(_MIN_GRID_STEPS, B)
            tile_m = min(tile_m,
                         max(128, _round_up(_cdiv(M, want_m_tiles), 128)))
    return tile_m, tile_m * per_lane


def _pick_tile_b(B2, C, itemsize):
    """Row tile for the dim-last (B', C) fast path."""
    sub = _sublane_rows(itemsize)
    c_lanes = _round_up(C, 128)
    per_row = _resident_bytes_per_col(c_lanes, itemsize)
    cap = max(sub, (_TILE_VMEM_BUDGET // per_row) // sub * sub)

    if B2 <= sub:
        tile_b = B2                             # full dim -> legal block
    else:
        tile_b = min(cap, (B2 // sub) * sub)
        if _cdiv(B2, tile_b) < _MIN_GRID_STEPS:
            tile_b = min(tile_b,
                         max(sub, _round_up(_cdiv(B2, _MIN_GRID_STEPS), sub)))
    return tile_b, tile_b * per_row


def _adf_softmax_kernel(mean_ref, var_ref, out_mean_ref, out_var_ref, *,
                        axis, min_variance, eps):
    """ADF softmax on one VMEM block; reduction over `axis` of the block."""
    fm = mean_ref[...].astype(jnp.float32)
    fv = var_ref[...].astype(jnp.float32) + min_variance

    log_gaussian_mean = fm + 0.5 * fv
    em = jnp.exp(log_gaussian_mean)
    # exp(2*lm) == exp(lm)^2: one EUP exp traded for a cheap VPU multiply.
    log_gaussian_variance = (em * em) * (jnp.exp(fv) - 1.0)

    denominator_mean = jnp.sum(em, axis=axis, keepdims=True)
    denominator_variance = jnp.sum(log_gaussian_variance, axis=axis,
                                   keepdims=True)

    # One reciprocal per reduced column, then broadcast multiply.
    inv_dm = pl.reciprocal(denominator_mean + eps, approx=False)
    outputs_mean = em * inv_dm
    outputs_variance = outputs_mean * jnp.sqrt(
        log_gaussian_variance + denominator_variance + eps)
    outputs_variance = outputs_variance + min_variance

    out_mean_ref[...] = outputs_mean.astype(out_mean_ref.dtype)
    out_var_ref[...] = outputs_variance.astype(out_var_ref.dtype)


def adf_softmax(features_mean, features_variance, *, dim=1,
                min_variance=1e-4, eps=1e-5):
    """ADF softmax over `dim`. Returns (outputs_mean, outputs_variance)."""
    assert features_mean.shape == features_variance.shape
    shape = features_mean.shape
    dtype = features_mean.dtype
    ndim = len(shape)
    dim = dim % ndim
    itemsize = jnp.dtype(dtype).itemsize

    B = math.prod(shape[:dim]) if dim > 0 else 1
    C = shape[dim]
    M = math.prod(shape[dim + 1:]) if dim + 1 < ndim else 1

    kernel = functools.partial(_adf_softmax_kernel, axis=1,
                               min_variance=min_variance, eps=eps)

    if M == 1:
        # Fast path: `dim` is (effectively) the last axis. Keep C lane-dense,
        # tile the batch rows on sublanes, reduce over the lane axis (XLU).
        fm = features_mean.reshape(B, C)
        fv = features_variance.reshape(B, C)
        tile_b, resident = _pick_tile_b(B, C, itemsize)
        grid = (_cdiv(B, tile_b),)
        in_block = pl.BlockSpec((tile_b, C), lambda i: (i, 0))
        out_block = pl.BlockSpec((tile_b, C), lambda i: (i, 0))
        out_mean, out_var = pl.pallas_call(
            kernel,
            out_shape=(jax.ShapeDtypeStruct((B, C), dtype),
                       jax.ShapeDtypeStruct((B, C), dtype)),
            grid_spec=pltpu.PrefetchScalarGridSpec(
                num_scalar_prefetch=0,
                grid=grid,
                in_specs=[in_block, in_block],
                out_specs=[out_block, out_block]),
            compiler_params=pltpu.CompilerParams(
                dimension_semantics=("parallel",),
                vmem_limit_bytes=_vmem_limit_bytes(resident)),
        )(fm, fv)
        return out_mean.reshape(shape), out_var.reshape(shape)

    # General path: free contiguous reshape to (B, C, M); reduce over the
    # sublane axis C; lane-dense stores along M; ragged last M-block (no pad).
    fm = features_mean.reshape(B, C, M)
    fv = features_variance.reshape(B, C, M)
    tile_m, resident = _pick_tile_m(B, C, M, itemsize)
    grid = (B, _cdiv(M, tile_m))
    in_block = pl.BlockSpec((1, C, tile_m), lambda b, i: (b, 0, i))
    out_block = pl.BlockSpec((1, C, tile_m), lambda b, i: (b, 0, i))

    out_mean, out_var = pl.pallas_call(
        kernel,
        out_shape=(jax.ShapeDtypeStruct((B, C, M), dtype),
                   jax.ShapeDtypeStruct((B, C, M), dtype)),
        grid_spec=pltpu.PrefetchScalarGridSpec(
            num_scalar_prefetch=0,
            grid=grid,
            in_specs=[in_block, in_block],
            out_specs=[out_block, out_block]),
        compiler_params=pltpu.CompilerParams(
            # Both axes independent -> both TCs fed on megacore parts.
            dimension_semantics=("parallel", "parallel"),
            vmem_limit_bytes=_vmem_limit_bytes(resident)),
    )(fm, fv)
    return out_mean.reshape(shape), out_var.reshape(shape)


def _adf_softmax_ref(features_mean, features_variance, *, dim=1,
                     min_variance=1e-4, eps=1e-5):
    """Pure-JAX reference mirroring the PyTorch module exactly."""
    fv = features_variance + min_variance
    lm = features_mean + 0.5 * fv
    lv = jnp.exp(2.0 * lm) * (jnp.exp(fv) - 1.0)
    lm = jnp.exp(lm)
    dm = jnp.sum(lm, axis=dim, keepdims=True)
    dv = jnp.sum(lv, axis=dim, keepdims=True)
    om = lm / (dm + eps)
    ov = om * jnp.sqrt(lv + dv + eps) + min_variance
    return om, ov


def _check(shape, dim, key, dtype=jnp.float32):
    k1, k2 = jax.random.split(key)
    fm = jax.random.normal(k1, shape, dtype=dtype)
    fv = jax.nn.softplus(jax.random.normal(k2, shape, dtype=dtype))
    om, ov = adf_softmax(fm, fv, dim=dim)
    om = jax.block_until_ready(om)
    ov = jax.block_until_ready(ov)
    rm, rv = _adf_softmax_ref(fm, fv, dim=dim)
    assert om.shape == shape and ov.shape == shape
    assert jnp.allclose(om, rm, atol=1e-5, rtol=1e-5)
    assert jnp.allclose(ov, rv, atol=1e-5, rtol=1e-5)


if __name__ == "__main__":
    key = jax.random.PRNGKey(0)
    k0, k1, k2 = jax.random.split(key, 3)

    # Canonical NCHW case, softmax over channels (dim=1).
    _check((2, 4, 16, 16), 1, k0)
    # Ragged last lane-block (M = 16*10 = 160, tile_m = 128).
    _check((2, 4, 16, 10), 1, k1)
    # Classification-shaped input: softmax over the last axis (fast path).
    _check((64, 10), -1, k2)

    print("KERNEL_OK")
</pallas_src>

<mosaic_0001>
module attributes {stable_mosaic.version = 11 : i64} {
  func.func @_adf_softmax_kernel(%arg0: i32, %arg1: i32, %arg2: memref<1x4x128xf32, #tpu.memory_space<vmem>>, %arg3: memref<1x4x128xf32, #tpu.memory_space<vmem>>, %arg4: memref<1x4x128xf32, #tpu.memory_space<vmem>>, %arg5: memref<1x4x128xf32, #tpu.memory_space<vmem>>) attributes {dimension_semantics = [#tpu.dimension_semantics<parallel>, #tpu.dimension_semantics<parallel>], iteration_bounds = array<i64: 2, 2>, scalar_prefetch = 0 : i64, scratch_operands = 0 : i64, tpu.core_type = #tpu.core_type<tc>, window_params = [{transform_indices = @transform_0, window_bounds = array<i64: 1, 4, 128>}, {transform_indices = @transform_1, window_bounds = array<i64: 1, 4, 128>}, {transform_indices = @transform_2, window_bounds = array<i64: 1, 4, 128>}, {transform_indices = @transform_3, window_bounds = array<i64: 1, 4, 128>}]} {
    %c0 = arith.constant 0 : index
    %c0_0 = arith.constant 0 : index
    %c0_1 = arith.constant 0 : index
    %0 = vector.load %arg2[%c0, %c0_0, %c0_1] : memref<1x4x128xf32, #tpu.memory_space<vmem>>, vector<1x4x128xf32>
    %c0_2 = arith.constant 0 : index
    %c0_3 = arith.constant 0 : index
    %c0_4 = arith.constant 0 : index
    %1 = vector.load %arg3[%c0_2, %c0_3, %c0_4] : memref<1x4x128xf32, #tpu.memory_space<vmem>>, vector<1x4x128xf32>
    %cst = arith.constant 9.99999974E-5 : f32
    %2 = vector.broadcast %cst : f32 to vector<1x4x128xf32>
    %3 = arith.addf %1, %2 : vector<1x4x128xf32>
    %cst_5 = arith.constant 5.000000e-01 : f32
    %4 = vector.broadcast %cst_5 : f32 to vector<1x4x128xf32>
    %5 = arith.mulf %4, %3 : vector<1x4x128xf32>
    %6 = arith.addf %0, %5 : vector<1x4x128xf32>
    %7 = math.exp %6 : vector<1x4x128xf32>
    %8 = arith.mulf %7, %7 : vector<1x4x128xf32>
    %9 = math.exp %3 : vector<1x4x128xf32>
    %cst_6 = arith.constant 1.000000e+00 : f32
    %10 = vector.broadcast %cst_6 : f32 to vector<1x4x128xf32>
    %11 = arith.subf %9, %10 : vector<1x4x128xf32>
    %12 = arith.mulf %8, %11 : vector<1x4x128xf32>
    %cst_7 = arith.constant dense<0.000000e+00> : vector<1x128xf32>
    %13 = vector.multi_reduction <add>, %7, %cst_7 [1] : vector<1x4x128xf32> to vector<1x128xf32>
    %14 = vector.shape_cast %13 : vector<1x128xf32> to vector<1x1x128xf32>
    %cst_8 = arith.constant dense<0.000000e+00> : vector<1x128xf32>
    %15 = vector.multi_reduction <add>, %12, %cst_8 [1] : vector<1x4x128xf32> to vector<1x128xf32>
    %16 = vector.shape_cast %15 : vector<1x128xf32> to vector<1x1x128xf32>
    %cst_9 = arith.constant 9.99999974E-6 : f32
    %17 = vector.broadcast %cst_9 : f32 to vector<1x1x128xf32>
    %18 = arith.addf %14, %17 : vector<1x1x128xf32>
    %19 = tpu.reciprocal %18 : vector<1x1x128xf32> -> vector<1x1x128xf32>
    %20 = vector.broadcast %19 : vector<1x1x128xf32> to vector<1x4x128xf32>
    %21 = arith.mulf %7, %20 : vector<1x4x128xf32>
    %22 = vector.broadcast %16 : vector<1x1x128xf32> to vector<1x4x128xf32>
    %23 = arith.addf %12, %22 : vector<1x4x128xf32>
    %cst_10 = arith.constant 9.99999974E-6 : f32
    %24 = vector.broadcast %cst_10 : f32 to vector<1x4x128xf32>
    %25 = arith.addf %23, %24 : vector<1x4x128xf32>
    %26 = math.sqrt %25 : vector<1x4x128xf32>
    %27 = arith.mulf %21, %26 : vector<1x4x128xf32>
    %cst_11 = arith.constant 9.99999974E-5 : f32
    %28 = vector.broadcast %cst_11 : f32 to vector<1x4x128xf32>
    %29 = arith.addf %27, %28 : vector<1x4x128xf32>
    %c0_12 = arith.constant 0 : index
    %c0_13 = arith.constant 0 : index
    %c0_14 = arith.constant 0 : index
    %30 = vector.load %arg4[%c0_12, %c0_13, %c0_14] : memref<1x4x128xf32, #tpu.memory_space<vmem>>, vector<1x4x128xf32>
    tpu.vector_store %arg4[%c0_12, %c0_13, %c0_14], %21 {strides = array<i32>} : memref<1x4x128xf32, #tpu.memory_space<vmem>>, vector<1x4x128xf32>,
    %c0_15 = arith.constant 0 : index
    %c0_16 = arith.constant 0 : index
    %c0_17 = arith.constant 0 : index
    %31 = vector.load %arg5[%c0_15, %c0_16, %c0_17] : memref<1x4x128xf32, #tpu.memory_space<vmem>>, vector<1x4x128xf32>
    tpu.vector_store %arg5[%c0_15, %c0_16, %c0_17], %29 {strides = array<i32>} : memref<1x4x128xf32, #tpu.memory_space<vmem>>, vector<1x4x128xf32>,
    return
  }
  func.func @transform_0(%arg0: i32, %arg1: i32) -> (i32, i32, i32) {
    %c0_i32 = arith.constant 0 : i32
    %c0_i32_0 = arith.constant 0 : i32
    return %arg0, %c0_i32, %arg1 : i32, i32, i32
  }
  func.func @transform_1(%arg0: i32, %arg1: i32) -> (i32, i32, i32) {
    %c0_i32 = arith.constant 0 : i32
    %c0_i32_0 = arith.constant 0 : i32
    return %arg0, %c0_i32, %arg1 : i32, i32, i32
  }
  func.func @transform_2(%arg0: i32, %arg1: i32) -> (i32, i32, i32) {
    %c0_i32 = arith.constant 0 : i32
    %c0_i32_0 = arith.constant 0 : i32
    return %arg0, %c0_i32, %arg1 : i32, i32, i32
  }
  func.func @transform_3(%arg0: i32, %arg1: i32) -> (i32, i32, i32) {
    %c0_i32 = arith.constant 0 : i32
    %c0_i32_0 = arith.constant 0 : i32
    return %arg0, %c0_i32, %arg1 : i32, i32, i32
  }
}

</mosaic_0001>

<bundles_post_ra>
// kernel: tpu_custom_call.1
= control target key start
LH: loop header
LB: loop body
LE: loop exit
PB: predicated region body
PF: predicated region fallthrough
CT: control target
= control target key end

     0   :  { %s1108_s0 = inlined_call_operand.hbm [shape: f32[2,4,256], index: 0, kind: input, shape index: {}]   ;;  %s1109_s1 = inlined_call_operand.hbm [shape: f32[2,4,256], index: 1, kind: input, shape index: {}]   ;;  %s1110_s2 = inlined_call_operand.hbm [shape: f32[2,4,256], index: 2, kind: output, shape index: {0}]   ;;  %s1111_s3 = inlined_call_operand.hbm [shape: f32[2,4,256], index: 3, kind: output, shape index: {1}]  }
   0x1   :  { %1116 = sst [smem:[#allocation14_spill]] %s1108_s0 }
   0x2   :  { %9 = vsyncpa [#allocation3], 0 }
   0x3   :  { %11 = vsyncpa [#allocation3 + $0x1], 0 }
   0x4   :  { %12 = vsyncpa [#allocation6], 0 }
   0x5   :  { %14 = vsyncpa [#allocation6 + $0x1], 0 }
   0x6   :  { %15 = vsyncpa [#allocation4], 0 }
   0x7   :  { %17 = vsyncpa [#allocation4 + $0x1], 0 }
   0x8   :  { %18 = vsyncpa [#allocation9], 0 }
   0x9   :  { %20 = vsyncpa [#allocation9 + $0x1], 0  ;;  %s821_s12 = smov 0   ;;  %s823_s13 = smov 0  }
   0xa   :  { %s825_s14 = smov 0   ;;  %s827_s15 = smov 0  }
   0xb   :  { %s829_s16 = smov 0   ;;  %s831_s17 = smov 0  }
   0xc   :  { %s833_s18 = smov 0   ;;  %s835_s19 = smov 0  }
   0xd LB: > { %s481_s20 = sadd.s32 4294967295, %s795_s19   ;;  %s482_s21 = sadd.s32 4294967294, %s795_s19   ;;  %s795_s19 = sphi %s835_s19, %s26_s19   ;;  %s791_s18 = sphi %s833_s18, %s1138_s18   ;;  %s787_s17 = sphi %s831_s17, %s1137_s17   ;;  %s783_s16 = sphi %s829_s16, %s1136_s16   ;;  %s779_s15 = sphi %s827_s15, %s1135_s15   ;;  %s775_s14 = sphi %s825_s14, %s1134_s14   ;;  %s771_s13 = sphi %s823_s13, %s1133_s13   ;;  %s767_s12 = sphi %s821_s12, %s1132_s12  }
   0xe   : > { %s35_s22 = sadd.s32 1, %s787_s17  ;;  %s38_s23 = sadd.s32 1, %s791_s18 }
   0xf   : > { %p36_p0 = scmp.ge.s32.totalorder %s35_s22, 2  ;;  %s47_s24 = sadd.s32 1, %s775_s14 }
  0x10   : > { %p54_p1 = scmp.ne.s32.totalorder %s775_s14, %s771_s13  ;;  %p55_p2 = scmp.eq.s32.totalorder %s795_s19, 0 }
  0x11   : > { %s1140_s22 = smov (%p36_p0, %s35_s22), 0  ;;  %s1142_s23 = smov (!%p36_p0, %s38_s23), %s791_s18 }
  0x12   : > { %s43_s25 = ssub.s32 %s787_s17, %s1140_s22  ;;  %p874_p3 = por %p55_p2, %p54_p1 }
  0x13   : > { %p40_p4 = scmp.ge.s32.totalorder %s1142_s23, 2  ;;  %p60_p5 = scmp.ne.s32.totalorder %s771_s13, %s767_s12 }
  0x14   : > { %p61_p6 = scmp.eq.s32.totalorder %s481_s20, 0  ;;  %p114_p7 = scmp.eq.s32.totalorder %s481_s20, 3 }
  0x15   : > { %s1144_s23 = smov (%p40_p4, %s1142_s23), 0  ;;  %p120_p10 = scmp.eq.s32.totalorder %s482_s21, 3 }
  0x16   : > { %p882_p8 = por %p61_p6, %p60_p5  ;;  %p886_p9 = por %p114_p7, %p54_p1 }
  0x17   : > { %s42_s29 = ssub.s32 %s791_s18, %s1144_s23  ;;  %p892_p12 = por %p120_p10, %p60_p5 }
  0x18   : > { %s1118_s27 = scalar_select %p882_p8, 1, 0 }
  0x19   : > { %s1119_s28 = scalar_select %p886_p9, 1, 0 }
  0x1a   : > { %s44_s30 = sor.u32 %s43_s25, %s42_s29  ;;  %p527_p13 = scmp.lt.s32.totalorder %s795_s19, 4 }
  0x1b   : > { %p45_p11 = scmp.eq.s32.totalorder %s44_s30, 0  ;;  %s898_s5 = sand.u32 1, %s775_s14  }
  0x1c   : > { %s1120_s4 = scalar_select %p892_p12, 1, 0 }
  0x1d   : > { %s901_s6 = scalar_select %p45_p11, %s775_s14, %s47_s24  }
  0x1e   : > { %s1112_s7 = sshll.u32 %s898_s5, 2  ;;  %s486_s8 = sshll.u32 %s791_s18, 1 }
  0x1f   : > { %s906_s9 = sadd.s32 %s787_s17, %s486_s8  ;;  %s172_s10 = scalar_lea.vmem [#allocation2], %s1112_s7 }
  0x20   : > { %s181_s11 = sshll.u32 %s172_s10, 4  ;;  %s1113_s20 = sshll.u32 %s906_s9, 6  ;;  %s911_s11 = int_to_ptr.vmem [resolvable:$true] %s181_s11 }
  0x21   : > { %s1121_s0 = sld [smem:[#allocation14_spill]]  ;;  %p922_p0 = pnand %p527_p13, %p874_p3 }
  0x22   : > { %s169_s30 = scalar_lea.sflag [#allocation3], %s898_s5 }
  0x23   : > { %p603_p5 = pneg %p922_p0 }
  0x27   : > { %s918_s29 = scalar_lea.hbm %s1121_s0, %s1113_s20  ;;  %s606_s21 = scalar_lea.hbm %s1121_s0, 256 }
  0x28   : > { %s601_s8 = scalar_lea.hbm %s918_s29, 64  ;;  %p607_p3 = scmp.lt.u32.totalorder %s918_s29, %s1121_s0 }
  0x29   : > { %p602_p4 = scmp.ne.s32.totalorder %s918_s29, %s601_s8  ;;  %p608_p10 = scmp.lt.u32.totalorder %s606_s21, %s601_s8 }
  0x2a   : > { %p610_p13 = scmp.lt.u32.totalorder %s601_s8, %s918_s29 }
  0x2b   : > { %p604_p6 = pnand %p603_p5, %p602_p4  ;;  %p609_p11 = por %p608_p10, %p607_p3 }
  0x2d   : > { %p605_p7 = pneg %p604_p6  ;;  %p611_p1 = por %p610_p13, %p609_p11 }
  0x2f   : > { %p612_p2 = pnand %p611_p1, %p605_p7 }
  0x31   : > { %615 = shalt.err (!%p612_p2)
}
  0x32   : > { %s616_s20 = scalar_lea.vmem %s911_s11, 64  ;;  %s797_s26 = smov [#allocation2]  }
  0x33   : > { %p617_p4 = scmp.ne.s32.totalorder %s911_s11, %s616_s20  ;;  %s621_s10 = sshll.u32 %s797_s26, 4  ;;  %s622_s10 = int_to_ptr.vmem [resolvable:$false] %s621_s10 }
  0x34   : > { %s623_s7 = scalar_lea.vmem %s622_s10, 128  ;;  %p624_p9 = scmp.lt.s32.totalorder %s911_s11, %s622_s10 }
  0x35   : > { %p619_p6 = pnand %p617_p4, %p603_p5  ;;  %p625_p3 = scmp.lt.s32.totalorder %s623_s7, %s616_s20 }
  0x37   : > { %p620_p12 = pneg %p619_p6  ;;  %p626_p10 = por %p625_p3, %p624_p9 }
  0x39   : > { %p627_p11 = pnand %p626_p10, %p620_p12 }
  0x3b   : > { %630 = shalt.err (!%p627_p11)
}
  0x3c   : > { %516 = dma.hbm_to_vmem [thread:$0]  (!%p922_p0), %s918_s29, 64, %s911_s11, %s169_s30  }
  0x3d   : > { %p1123_p1 = scmp.lt.s32.totalorder %s795_s19, 5  ;;  %p1124_p2 = scmp.ge.s32.totalorder %s795_s19, 1 }
  0x3e   : > { %s1126_s20 = sshll.u32 %s906_s9, 6  ;;  %s1127_s10 = sshll.u32 %s898_s5, 2 }
  0x3f   : > { %p958_p7 = pnand %p1124_p2, %p1123_p1  ;;  %s967_s26 = scalar_lea.hbm %s1109_s1, %s1126_s20 }
  0x40   : > { %s192_s7 = scalar_lea.vmem [#allocation5], %s1127_s10  ;;  %s189_s11 = scalar_lea.sflag [#allocation6], %s898_s5 }
  0x41   : > { %s1125_s8 = scalar_select %p958_p7, 1, 0 }
  0x42   : > { %s201_s0 = sshll.u32 %s192_s7, 4  ;;  %s631_s29 = scalar_lea.hbm %s967_s26, 64  ;;  %s202_s0 = int_to_ptr.vmem [resolvable:$true] %s201_s0 }
  0x43   : > { %p632_p9 = scmp.ne.s32.totalorder %s967_s26, %s631_s29  ;;  %s636_s20 = scalar_lea.hbm %s1109_s1, 256 }
  0x44   : > { %p637_p4 = scmp.lt.u32.totalorder %s967_s26, %s1109_s1  ;;  %p638_p6 = scmp.lt.u32.totalorder %s636_s20, %s631_s29 }
  0x45   : > { %p634_p12 = pnand %p632_p9, %p603_p5  ;;  %p640_p10 = scmp.lt.u32.totalorder %s631_s29, %s967_s26 }
  0x46   : > { %p639_p3 = por %p638_p6, %p637_p4 }
  0x47   : > { %p635_p13 = pneg %p634_p12 }
  0x48   : > { %p641_p11 = por %p640_p10, %p639_p3 }
  0x4a   : > { %p642_p1 = pnand %p641_p11, %p635_p13 }
  0x4c   : > { %645 = shalt.err (!%p642_p1)
}
  0x4d   : > { %s646_s5 = scalar_lea.vmem %s202_s0, 64  ;;  %s798_s10 = smov [#allocation5]  }
  0x4e   : > { %p647_p2 = scmp.ne.s32.totalorder %s202_s0, %s646_s5  ;;  %s651_s7 = sshll.u32 %s798_s10, 4  ;;  %s652_s7 = int_to_ptr.vmem [resolvable:$false] %s651_s7 }
  0x4f   : > { %s653_s9 = scalar_lea.vmem %s652_s7, 128  ;;  %p654_p8 = scmp.lt.s32.totalorder %s202_s0, %s652_s7 }
  0x50   : > { %p649_p9 = pnand %p647_p2, %p603_p5  ;;  %p655_p7 = scmp.lt.s32.totalorder %s653_s9, %s646_s5 }
  0x52   : > { %p650_p12 = pneg %p649_p9  ;;  %p656_p4 = por %p655_p7, %p654_p8 }
  0x54   : > { %p657_p6 = pnand %p656_p4, %p650_p12 }
  0x56   : > { %660 = shalt.err (!%p657_p6)
}
  0x57   : > { %519 = dma.hbm_to_vmem [thread:$0]  (!%p922_p0), %s967_s26, 64, %s202_s0, %s189_s11  }
  0x58   : > { %p1128_p13 = scmp.ne.s32.totalorder %s1125_s8, 0 }
  0x59   : > { %s994_s29 = sand.u32 (!%p1128_p13), 1, %s771_s13   ;;  %p1129_p8 = scmp.ne.s32.totalorder (!%p1128_p13), %s1118_s27, 0 }
  0x5a   : > { %210 = sbr.rel (%p1128_p13) target bundleno = 186 (0xba), region = 28  ;;  %s997_s30 = sshll.u32 (!%p1128_p13), %s994_s29, 2 }
  0x5b   : > { %s213_s20 = scalar_lea.sflag (!%p1128_p13), [#allocation3], %s994_s29  ;;  %s216_s21 = scalar_lea.vmem (!%p1128_p13), [#allocation2], %s997_s30 }
  0x61   : > { %750 = dma.done.wait (%p1129_p8), %s213_s20, 64  }
  0x62   : > { %752 = vsyncadd (%p1129_p8), %s213_s20, 4294967232  ;;  %s222_s0 = scalar_lea.sflag [#allocation6], %s994_s29  ;;  %s225_s24 = scalar_lea.vmem [#allocation5], %s997_s30 }
  0x63   : > { %754 = dma.done.wait (%p1129_p8), %s222_s0, 64  }
  0x64   : > { %756 = vsyncadd (%p1129_p8), %s222_s0, 4294967232  ;;  %v259_v0 = vld [vmem:[%s225_s24] sm:$0xf]  ;;  %v258_v2 = vld [vmem:[%s216_s21] sm:$0xf]  ;;  %vm270_vm0 = vcmask 1043456  }
  0x65   : > { %v260_v1 = vadd.f32 0.0001, %v259_v0  ;;  %s499_s27 = sshll.u32 %s783_s16, 1  ;;  %s250_s26 = scalar_lea.vmem [#allocation7], %s997_s30 }
  0x66   : > { %s1013_s8 = sadd.s32 %s779_s15, %s499_s27  ;;  %s322_s11 = sshll.u32 %s250_s26, 4  ;;  %s1017_s11 = int_to_ptr.vmem [resolvable:$true] %s322_s11 }
  0x67   : > { %v261_v3 = vmul.f32 0.5, %v260_v1  ;;  %v266_v4 = vmul.f32 1.442695, %v260_v1  ;;  %s500_s25 = sshll.u32 %s1013_s8, 6  ;;  %s302_s15 = scalar_lea.sflag [#allocation4], %s994_s29 }
  0x68   : > { %s1024_s16 = scalar_lea.hbm %s1110_s2, %s500_s25  ;;  %s661_s7 = scalar_lea.vmem %s1017_s11, 64 }
  0x69   : > { %v262_v5 = vadd.f32 %v261_v3, %v258_v2  ;;  %593 = vpow2.f32 %v266_v4  ;;  %p662_p0 = scmp.ne.s32.totalorder %s1017_s11, %s661_s7  ;;  %p1130_p5 = scmp.ne.s32.totalorder %s1119_s28, 0 }
  0x6a   : > { %s799_s9 = smov [#allocation7]  }
  0x6b   : > { %v263_v6 = vmul.f32 1.442695, %v262_v5  ;;  %p663_p7 = pnand %p662_p0, %p1130_p5  ;;  %s665_s20 = sshll.u32 %s799_s9, 4  ;;  %s666_s20 = int_to_ptr.vmem [resolvable:$false] %s665_s20 }
  0x6c   : > { %s667_s21 = scalar_lea.vmem %s666_s20, 128  ;;  %p668_p10 = scmp.lt.s32.totalorder %s1017_s11, %s666_s20 }
  0x6d   : > { %595 = vpow2.f32 %v263_v6  ;;  %p664_p3 = pneg %p663_p7  ;;  %p669_p11 = scmp.lt.s32.totalorder %s667_s21, %s661_s7 }
  0x6f   : > { %p670_p1 = por %p669_p11, %p668_p10 }
  0x71   : > { %p671_p2 = pnand %p670_p1, %p664_p3 }
  0x73   : > { %v594_v7 = vpop.eup %593 }
  0x74   : > { %v496_v8 = vadd.f32 -1.0, %v594_v7 }
  0x77   : > { %v596_v9 = vpop.eup %595 }
  0x78   : > { %v265_v10 = vmul.f32 %v596_v9, %v596_v9  ;;  %v271_v11 = vsel %vm270_vm0, %v596_v9, 0.0 }
  0x79   : > { %v272_v12 = vrot.slane %v271_v11, 4 }
  0x7a   : > { %v269_v13 = vmul.f32 %v496_v8, %v265_v10 }
  0x7b   : > { %v273_v14 = vadd.f32 %v272_v12, %v271_v11 }
  0x7c   : > { %v278_v15 = vsel %vm270_vm0, %v269_v13, 0.0 }
  0x7d   : > { %v274_v16 = vrot.slane %v273_v14, 2  ;;  %v279_v17 = vrot.slane %v278_v15, 4 }
  0x7f   : > { %v275_v18 = vadd.f32 %v274_v16, %v273_v14  ;;  %v280_v19 = vadd.f32 %v279_v17, %v278_v15 }
  0x81   : > { %v276_v20 = vrot.slane %v275_v18, 1  ;;  %v281_v21 = vrot.slane %v280_v19, 2 }
  0x83   : > { %v277_v22 = vadd.f32 %v276_v20, %v275_v18  ;;  %v282_v23 = vadd.f32 %v281_v21, %v280_v19 }
  0x85   : > { %v283_v24 = vrot.slane %v282_v23, 1  ;;  %v285_v25 = vadd.f32 1e-05, %v277_v22 }
  0x87   : > { %v284_v26 = vadd.f32 %v283_v24, %v282_v23  ;;  %597 = vrcp.f32 %v285_v25 }
  0x89   : > { %v288_v27 = vadd.f32 %v284_v26, %v269_v13 }
  0x8b   : > { %v289_v28 = vadd.f32 1e-05, %v288_v27 }
  0x8d   : > { %599 = vrsqrt.f32 %v289_v28 }
  0x91   : > { %v598_v29 = vpop.eup %597 }
  0x92   : > { %v287_v30 = vmul.f32 %v598_v29, %v596_v9 }
  0x94   : > { %299 = vst [vmem:[%s250_s26] sm:$0xf] %v287_v30 }
  0x95   : > { %674 = shalt.err (!%p671_p2)
}
  0x96   : > { %s675_s0 = scalar_lea.hbm %s1024_s16, 64  ;;  %s679_s26 = scalar_lea.hbm %s1110_s2, 256 }
  0x97   : > { %p676_p9 = scmp.ne.s32.totalorder %s1024_s16, %s675_s0  ;;  %p680_p6 = scmp.lt.u32.totalorder %s1024_s16, %s1110_s2 }
  0x98   : > { %p681_p13 = scmp.lt.u32.totalorder %s679_s26, %s675_s0  ;;  %p683_p0 = scmp.lt.u32.totalorder %s675_s0, %s1024_s16 }
  0x99   : > { %p677_p12 = pnand %p676_p9, %p1130_p5 }
  0x9a   : > { %p682_p8 = por %p681_p13, %p680_p6 }
  0x9b   : > { %p678_p4 = pneg %p677_p12 }
  0x9c   : > { %p684_p7 = por %p683_p0, %p682_p8 }
  0x9e   : > { %p685_p3 = pnand %p684_p7, %p678_p4 }
  0xa0   : > { %688 = shalt.err (!%p685_p3)
}
  0xa1   : > { %509 = dma.vmem_to_hbm [thread:$0]  (%p1130_p5), %s1017_s11, 64, %s1024_s16, %s302_s15   ;;  %v600_v31 = vpop.eup %599  ;;  %vm292_vm1 = vcmp.eq.f32.partialorder %v289_v28, inf  ;;  %v295_v32 = vand.u32 2147483648, %v289_v28  ;;  %vm294_vm2 = vcmp.eq.f32.partialorder %v289_v28, 0.0 }
  0xa2   : > { %v291_v33 = vmul.f32 %v600_v31, %v289_v28  ;;  %s257_s7 = scalar_lea.vmem [#allocation8], %s997_s30  ;;  %s1056_s16 = scalar_lea.hbm %s1111_s3, %s500_s25 }
  0xa3   : > { %s337_s9 = sshll.u32 %s257_s7, 4  ;;  %s307_s15 = scalar_lea.sflag [#allocation9], %s994_s29  ;;  %s1049_s9 = int_to_ptr.vmem [resolvable:$true] %s337_s9 }
  0xa4   : > { %v293_v34 = vsel %vm292_vm1, %v289_v28, %v291_v33  ;;  %s689_s21 = scalar_lea.vmem %s1049_s9, 64  ;;  %s800_s30 = smov [#allocation8]  }
  0xa5   : > { %v296_v35 = vsel %vm294_vm2, %v295_v32, %v293_v34  ;;  %p690_p10 = scmp.ne.s32.totalorder %s1049_s9, %s689_s21  ;;  %s693_s0 = sshll.u32 %s800_s30, 4  ;;  %s694_s0 = int_to_ptr.vmem [resolvable:$false] %s693_s0 }
  0xa6   : > { %v297_v36 = vmul.f32 %v296_v35, %v287_v30  ;;  %s695_s24 = scalar_lea.vmem %s694_s0, 128  ;;  %p696_p2 = scmp.lt.s32.totalorder %s1049_s9, %s694_s0 }
  0xa7   : > { %p691_p11 = pnand %p690_p10, %p1130_p5  ;;  %p697_p9 = scmp.lt.s32.totalorder %s695_s24, %s689_s21 }
  0xa8   : > { %v298_v37 = vadd.f32 0.0001, %v297_v36 }
  0xa9   : > { %p692_p1 = pneg %p691_p11  ;;  %p698_p12 = por %p697_p9, %p696_p2 }
  0xaa   : > { %300 = vst [vmem:[%s257_s7] sm:$0xf] %v298_v37 }
  0xab   : > { %p699_p4 = pnand %p698_p12, %p692_p1 }
  0xad   : > { %702 = shalt.err (!%p699_p4)
}
  0xae   : > { %s703_s29 = scalar_lea.hbm %s1056_s16, 64  ;;  %s707_s27 = scalar_lea.hbm %s1111_s3, 256 }
  0xaf   : > { %p704_p6 = scmp.ne.s32.totalorder %s1056_s16, %s703_s29  ;;  %p708_p0 = scmp.lt.u32.totalorder %s1056_s16, %s1111_s3 }
  0xb0   : > { %p709_p7 = scmp.lt.u32.totalorder %s707_s27, %s703_s29  ;;  %p711_p10 = scmp.lt.u32.totalorder %s703_s29, %s1056_s16 }
  0xb1   : > { %p705_p13 = pnand %p704_p6, %p1130_p5 }
  0xb2   : > { %p710_p3 = por %p709_p7, %p708_p0 }
  0xb3   : > { %p706_p8 = pneg %p705_p13 }
  0xb4   : > { %p712_p11 = por %p711_p10, %p710_p3 }
  0xb6   : > { %p713_p1 = pnand %p712_p11, %p706_p8 }
  0xb8   : > { %716 = shalt.err (!%p713_p1)
}
  0xb9   : > { %510 = dma.vmem_to_hbm [thread:$0]  (%p1130_p5), %s1049_s9, 64, %s1056_s16, %s307_s15  }
  0xba PF: > { %p528_p2 = scmp.ge.s32.totalorder %s795_s19, 2  ;;  %s349_s10 = sand.u32 1, %s767_s12  }
  0xbb   : > { %p1131_p9 = scmp.ne.s32.totalorder %s1120_s4, 0  ;;  %s350_s7 = scalar_lea.sflag [#allocation4], %s349_s10 }
  0xbd   : > { %p521_p12 = pnand %p528_p2, %p1131_p9 }
  0xbf   : > { %758 = dma.done.wait (!%p521_p12), %s350_s7, 64  }
  0xc0   : > { %760 = vsyncadd (!%p521_p12), %s350_s7, 4294967232  ;;  %s359_s20 = scalar_lea.sflag [#allocation9], %s349_s10 }
  0xc1   : > { %762 = dma.done.wait (!%p521_p12), %s359_s20, 64  }
  0xc2   : > { %764 = vsyncadd (!%p521_p12), %s359_s20, 4294967232  ;;  %s26_s19 = sadd.s32 1, %s795_s19   ;;  %s1132_s12 = smov %s771_s13 }
  0xc3   : > { %p23_p4 = scmp.ge.s32.totalorder %s26_s19, 6   ;;  %s1133_s13 = smov %s775_s14 }
  0xc4   : > { %s1134_s14 = smov %s901_s6  ;;  %s1135_s15 = smov %s787_s17 }
  0xc5   : > { %s1136_s16 = smov %s791_s18  ;;  %s1137_s17 = smov %s1140_s22 }
  0xc6   : > { %s1138_s18 = smov %s1144_s23  ;;  %25 = sbr.rel (!%p23_p4) target bundleno = 13 (0xd), region = 103 }
  0xcd   :  { %364 = vsyncpa [#allocation3], 1 }
  0xce   :  { %366 = vsyncpa [#allocation3 + $0x1], 1 }
  0xcf   :  { %367 = vsyncpa [#allocation6], 1 }
  0xd0   :  { %369 = vsyncpa [#allocation6 + $0x1], 1 }
  0xd1   :  { %370 = vsyncpa [#allocation4], 1 }
  0xd2   :  { %372 = vsyncpa [#allocation4 + $0x1], 1 }
  0xd3   :  { %373 = vsyncpa [#allocation9], 1 }
  0xd4   :  { %375 = vsyncpa [#allocation9 + $0x1], 1 }

</bundles_post_ra>
